<compile_context>
chip_gen: v6e
topology: v6e:2x2x1
jax: 0.10.0
libtpu: 0.0.40
codegen_flags: <defaults>
</compile_context>

<pallas_src>
import math

import jax
import jax.numpy as jnp
from jax.experimental import pallas as pl
from jax.experimental.pallas import tpu as pltpu


def _decoder_zinb_kernel(z_ref, w1_ref, b1_ref, wz_ref,
                         pi_ref, disp_ref, mean_ref, acc_ref):
    k = pl.program_id(2)

    @pl.when(k == 0)
    def _():
        acc_ref[...] = jnp.zeros_like(acc_ref)

    # h[:, k-tile] = ReLU(BN(Linear(z)))[:, k-tile]; BN folded into (w1', b1').
    # Recomputed per grid step (H is tiny) so VMEM use is independent of D and
    # both the batch and column grid axes stay megacore-parallel.
    h = jnp.dot(z_ref[...], w1_ref[...],
                preferred_element_type=jnp.float32) + b1_ref[...]
    h = jnp.maximum(h, 0.0).astype(jnp.bfloat16)
    # TODO(synk): training-mode dropout (torch Bernoulli stream) and
    # batch-statistics BatchNorm are not replicated; eval-mode semantics only.

    # K-tiled shared ZINB matmul (bf16 operands, f32 accumulation on MXU).
    acc_ref[...] += jnp.dot(h, wz_ref[...], preferred_element_type=jnp.float32)

    @pl.when(k == pl.num_programs(2) - 1)
    def _():
        hz = acc_ref[...]
        # One exp serves all three heads (EUP is the scarce VLIW slot).
        e = jnp.exp(jnp.minimum(hz, 20.0))
        one_plus_e = 1.0 + e
        # pi = sigmoid(hz) = e / (1 + e).  approx reciprocal (EUP) is within the
        # test tolerance; |err| vs exact sigmoid is ~2e-9 only when hz > 20.
        pi_ref[...] = (e * pl.reciprocal(one_plus_e, approx=True)
                       ).astype(pi_ref.dtype)
        # disp = clamp(softplus(hz), 1e-4, 1e4); torch softplus threshold = 20.
        sp = jnp.where(hz > 20.0, hz, jnp.log(one_plus_e))
        disp_ref[...] = jnp.clip(sp, 1e-4, 1e4).astype(disp_ref.dtype)
        # mean = clamp(exp(hz), 1e-5, 1e6); min(hz, 20) is exact since exp(20) > 1e6.
        mean_ref[...] = jnp.clip(e, 1e-5, 1e6).astype(mean_ref.dtype)


def _round_up(x, m):
    return ((x + m - 1) // m) * m


def _pad2(x, rows, cols):
    pr, pc = rows - x.shape[0], cols - x.shape[1]
    if pr == 0 and pc == 0:
        return x
    return jnp.pad(x, ((0, pr), (0, pc)))


def decoder_zinb(z, w1, b1, gamma, beta, running_mean, running_var, wz,
                 *, tm=None, tn=None, tk=None, out_dtype=jnp.float32):
    B, H = z.shape
    D = w1.shape[1]

    # ---- fold eval-mode BatchNorm1d (eps=1e-3) into the Linear --------------
    scale = gamma.astype(jnp.float32) * jax.lax.rsqrt(
        running_var.astype(jnp.float32) + 1e-3)
    w1_f = w1.astype(jnp.float32) * scale[None, :]
    b1_f = ((b1.astype(jnp.float32) - running_mean.astype(jnp.float32)) * scale
            + beta.astype(jnp.float32)).reshape(1, D)

    # ---- per-generation tile / VMEM budget ----------------------------------
    kind = jax.devices()[0].device_kind.lower()
    big_vmem = ("v5" in kind) or ("v6" in kind)        # 128 MiB VMEM parts
    if tn is None:
        tn = min(_round_up(D, 128), 1024 if big_vmem else 512)
    if tk is None:
        tk = tn
    if tm is None:
        tm = min(_round_up(B, 8), 512 if big_vmem else 256)
    vmem_limit = (96 if big_vmem else 40) * 1024 * 1024

    # ---- pad to tile multiples (zeros: padded K-rows/cols contribute 0) -----
    Bp = _round_up(B, tm)
    Dp = _round_up(D, math.lcm(tn, tk))

    z_p = _pad2(z.astype(jnp.bfloat16), Bp, H)
    w1_p = _pad2(w1_f.astype(jnp.bfloat16), H, Dp)
    b1_p = _pad2(b1_f, 1, Dp)                          # f32, BN-folded bias
    wz_p = _pad2(wz.astype(jnp.bfloat16), Dp, Dp)

    gi, gj, gk = Bp // tm, Dp // tn, Dp // tk
    out_bytes = jnp.dtype(out_dtype).itemsize

    cost = pl.CostEstimate(
        flops=2 * Bp * H * Dp * gj + 2 * Bp * Dp * Dp,
        transcendentals=3 * Bp * Dp,                   # exp + log + reciprocal
        bytes_accessed=(Bp * H * 2                     # z (fetched per batch tile)
                        + gi * gj * (H * Dp * 2 + Dp * 4)   # w1' + b1' re-streamed
                        + gi * Dp * Dp * 2                   # wz re-streamed per batch tile
                        + 3 * Bp * Dp * out_bytes),          # outputs
    )

    out_shape_p = jax.ShapeDtypeStruct((Bp, Dp), out_dtype)
    fn = pl.pallas_call(
        _decoder_zinb_kernel,
        out_shape=(out_shape_p, out_shape_p, out_shape_p),
        grid_spec=pltpu.PrefetchScalarGridSpec(
            num_scalar_prefetch=0,
            grid=(gi, gj, gk),
            in_specs=[
                pl.BlockSpec((tm, H), lambda i, j, k: (i, 0)),    # z     (bf16)
                pl.BlockSpec((H, tk), lambda i, j, k: (0, k)),    # w1'   (bf16, BN-folded)
                pl.BlockSpec((1, tk), lambda i, j, k: (0, k)),    # b1'   (f32,  BN-folded)
                pl.BlockSpec((tk, tn), lambda i, j, k: (k, j)),   # wz    (bf16, K-tiled)
            ],
            out_specs=(
                pl.BlockSpec((tm, tn), lambda i, j, k: (i, j)),   # pi
                pl.BlockSpec((tm, tn), lambda i, j, k: (i, j)),   # disp
                pl.BlockSpec((tm, tn), lambda i, j, k: (i, j)),   # mean
            ),
            scratch_shapes=[pltpu.VMEM((tm, tn), jnp.float32)],   # hz accumulator
        ),
        compiler_params=pltpu.CompilerParams(
            # batch and column tiles are independent (megacore-shardable on v7x
            # even for small B); the k axis carries the accumulator.
            dimension_semantics=("parallel", "parallel", "arbitrary"),
            vmem_limit_bytes=vmem_limit,
        ),
        cost_estimate=cost,
    )
    pi, disp, mean = fn(z_p, w1_p, b1_p, wz_p)
    if (Bp, Dp) != (B, D):
        pi, disp, mean = pi[:B, :D], disp[:B, :D], mean[:B, :D]
    return pi, disp, mean


def decoder_zinb_ref(z, w1, b1, gamma, beta, running_mean, running_var, wz):
    """Pure-JAX f32 reference (eval-mode PyTorch semantics)."""
    h = z @ w1 + b1
    h = (h - running_mean) * jax.lax.rsqrt(running_var + 1e-3) * gamma + beta
    h = jnp.maximum(h, 0.0)
    hz = h @ wz
    pi = jax.nn.sigmoid(hz)
    sp = jnp.where(hz > 20.0, hz, jnp.log1p(jnp.exp(jnp.minimum(hz, 20.0))))
    disp = jnp.clip(sp, 1e-4, 1e4)
    mean = jnp.clip(jnp.exp(hz), 1e-5, 1e6)
    return pi, disp, mean


def init_params(key, hidden, input_size):
    k1, k2, k3 = jax.random.split(key, 3)
    # nn.Linear(hidden, input_size) default init: U(-1/sqrt(hidden), 1/sqrt(hidden))
    lim1 = 1.0 / jnp.sqrt(hidden)
    w1 = jax.random.uniform(k1, (hidden, input_size), jnp.float32, -lim1, lim1)
    b1 = jax.random.uniform(k2, (input_size,), jnp.float32, -lim1, lim1)
    # BatchNorm1d affine + running stats (fresh init)
    gamma = jnp.ones((input_size,), jnp.float32)
    beta = jnp.zeros((input_size,), jnp.float32)
    running_mean = jnp.zeros((input_size,), jnp.float32)
    running_var = jnp.ones((input_size,), jnp.float32)
    # layer_zinb.w: xavier_uniform_(gain=1) on (input_size, input_size)
    limz = jnp.sqrt(6.0 / (input_size + input_size))
    wz = jax.random.uniform(k3, (input_size, input_size), jnp.float32, -limz, limz)
    return w1, b1, gamma, beta, running_mean, running_var, wz


if __name__ == "__main__":
    B, HIDDEN, INPUT_SIZE = 8, 32, 128

    key = jax.random.PRNGKey(0)
    kz, kp = jax.random.split(key)
    z = jax.random.normal(kz, (B, HIDDEN), jnp.float32)
    params = init_params(kp, HIDDEN, INPUT_SIZE)

    pi, disp, mean = decoder_zinb(z, *params)
    jax.block_until_ready((pi, disp, mean))

    assert pi.shape == (B, INPUT_SIZE)
    assert disp.shape == (B, INPUT_SIZE)
    assert mean.shape == (B, INPUT_SIZE)

    # loose-tolerance sanity check vs pure-JAX f32 reference (kernel streams
    # bf16 weights/activations + uses approx reciprocal, so tolerances are generous)
    pi_r, disp_r, mean_r = decoder_zinb_ref(z, *params)
    assert jnp.allclose(pi, pi_r, rtol=5e-2, atol=5e-2)
    assert jnp.allclose(disp, disp_r, rtol=5e-2, atol=5e-2)
    assert jnp.allclose(mean, mean_r, rtol=5e-2, atol=5e-2)

    print("KERNEL_OK")
</pallas_src>

<mosaic_0001>
module attributes {stable_mosaic.version = 11 : i64} {
  func.func @_decoder_zinb_kernel(%arg0: i32, %arg1: i32, %arg2: i32, %arg3: memref<8x32xbf16, #tpu.memory_space<vmem>>, %arg4: memref<32x128xbf16, #tpu.memory_space<vmem>>, %arg5: memref<1x128xf32, #tpu.memory_space<vmem>>, %arg6: memref<128x128xbf16, #tpu.memory_space<vmem>>, %arg7: memref<8x128xf32, #tpu.memory_space<vmem>>, %arg8: memref<8x128xf32, #tpu.memory_space<vmem>>, %arg9: memref<8x128xf32, #tpu.memory_space<vmem>>, %arg10: memref<8x128xf32, #tpu.memory_space<vmem>>) attributes {dimension_semantics = [#tpu.dimension_semantics<parallel>, #tpu.dimension_semantics<parallel>, #tpu.dimension_semantics<arbitrary>], iteration_bounds = array<i64: 1, 1, 1>, scalar_prefetch = 0 : i64, scratch_operands = 1 : i64, tpu.core_type = #tpu.core_type<tc>, window_params = [{transform_indices = @transform_0, window_bounds = array<i64: 8, 32>}, {transform_indices = @transform_1, window_bounds = array<i64: 32, 128>}, {transform_indices = @transform_2, window_bounds = array<i64: 1, 128>}, {transform_indices = @transform_3, window_bounds = array<i64: 128, 128>}, {transform_indices = @transform_4, window_bounds = array<i64: 8, 128>}, {transform_indices = @transform_5, window_bounds = array<i64: 8, 128>}, {transform_indices = @transform_6, window_bounds = array<i64: 8, 128>}]} {
    %c0_i32 = arith.constant 0 : i32
    %0 = arith.cmpi eq, %arg2, %c0_i32 : i32
    %1 = arith.extui %0 : i1 to i32
    %c0_i32_0 = arith.constant 0 : i32
    %2 = arith.cmpi ne, %1, %c0_i32_0 : i32
    scf.if %2 {
      %cst_16 = arith.constant 0.000000e+00 : f32
      %20 = vector.broadcast %cst_16 : f32 to vector<8x128xf32>
      %c0_17 = arith.constant 0 : index
      %c0_18 = arith.constant 0 : index
      %21 = vector.load %arg10[%c0_17, %c0_18] : memref<8x128xf32, #tpu.memory_space<vmem>>, vector<8x128xf32>
      tpu.vector_store %arg10[%c0_17, %c0_18], %20 {strides = array<i32>} : memref<8x128xf32, #tpu.memory_space<vmem>>, vector<8x128xf32>,
    } else {
    }
    %c0 = arith.constant 0 : index
    %c0_1 = arith.constant 0 : index
    %3 = vector.load %arg3[%c0, %c0_1] : memref<8x32xbf16, #tpu.memory_space<vmem>>, vector<8x32xbf16>
    %c0_2 = arith.constant 0 : index
    %c0_3 = arith.constant 0 : index
    %4 = vector.load %arg4[%c0_2, %c0_3] : memref<32x128xbf16, #tpu.memory_space<vmem>>, vector<32x128xbf16>
    %cst = arith.constant dense<0.000000e+00> : vector<8x128xf32>
    %5 = tpu.matmul %3, %4, %cst {dimension_numbers = #tpu.dot_dimension_numbers<[1], [0], [0], [1], [0, 0, 1, 1], [], []>} : vector<8x32xbf16>, vector<32x128xbf16>, vector<8x128xf32> -> vector<8x128xf32>
    %c0_4 = arith.constant 0 : index
    %c0_5 = arith.constant 0 : index
    %6 = vector.load %arg5[%c0_4, %c0_5] : memref<1x128xf32, #tpu.memory_space<vmem>>, vector<1x128xf32>
    %7 = vector.broadcast %6 : vector<1x128xf32> to vector<8x128xf32>
    %8 = arith.addf %5, %7 : vector<8x128xf32>
    %cst_6 = arith.constant 0.000000e+00 : f32
    %9 = vector.broadcast %cst_6 : f32 to vector<8x128xf32>
    %10 = arith.maximumf %8, %9 : vector<8x128xf32>
    %11 = arith.truncf %10 : vector<8x128xf32> to vector<8x128xbf16>
    %c0_7 = arith.constant 0 : index
    %c0_8 = arith.constant 0 : index
    %12 = vector.load %arg10[%c0_7, %c0_8] : memref<8x128xf32, #tpu.memory_space<vmem>>, vector<8x128xf32>
    %c0_9 = arith.constant 0 : index
    %c0_10 = arith.constant 0 : index
    %13 = vector.load %arg6[%c0_9, %c0_10] : memref<128x128xbf16, #tpu.memory_space<vmem>>, vector<128x128xbf16>
    %cst_11 = arith.constant dense<0.000000e+00> : vector<8x128xf32>
    %14 = tpu.matmul %11, %13, %cst_11 {dimension_numbers = #tpu.dot_dimension_numbers<[1], [0], [0], [1], [0, 0, 1, 1], [], []>} : vector<8x128xbf16>, vector<128x128xbf16>, vector<8x128xf32> -> vector<8x128xf32>
    %15 = arith.addf %12, %14 : vector<8x128xf32>
    %c0_12 = arith.constant 0 : index
    %c0_13 = arith.constant 0 : index
    %16 = vector.load %arg10[%c0_12, %c0_13] : memref<8x128xf32, #tpu.memory_space<vmem>>, vector<8x128xf32>
    tpu.vector_store %arg10[%c0_12, %c0_13], %15 {strides = array<i32>} : memref<8x128xf32, #tpu.memory_space<vmem>>, vector<8x128xf32>,
    %c0_i32_14 = arith.constant 0 : i32
    %17 = arith.cmpi eq, %arg2, %c0_i32_14 : i32
    %18 = arith.extui %17 : i1 to i32
    %c0_i32_15 = arith.constant 0 : i32
    %19 = arith.cmpi ne, %18, %c0_i32_15 : i32
    scf.if %19 {
      %c0_16 = arith.constant 0 : index
      %c0_17 = arith.constant 0 : index
      %20 = vector.load %arg10[%c0_16, %c0_17] : memref<8x128xf32, #tpu.memory_space<vmem>>, vector<8x128xf32>
      %cst_18 = arith.constant 2.000000e+01 : f32
      %21 = vector.broadcast %cst_18 : f32 to vector<8x128xf32>
      %22 = arith.minimumf %20, %21 : vector<8x128xf32>
      %23 = math.exp %22 : vector<8x128xf32>
      %cst_19 = arith.constant 1.000000e+00 : f32
      %24 = vector.broadcast %cst_19 : f32 to vector<8x128xf32>
      %25 = arith.addf %24, %23 : vector<8x128xf32>
      %26 = tpu.reciprocal %25 {approx = true} : vector<8x128xf32> -> vector<8x128xf32>
      %27 = arith.mulf %23, %26 : vector<8x128xf32>
      %c0_20 = arith.constant 0 : index
      %c0_21 = arith.constant 0 : index
      %28 = vector.load %arg7[%c0_20, %c0_21] : memref<8x128xf32, #tpu.memory_space<vmem>>, vector<8x128xf32>
      tpu.vector_store %arg7[%c0_20, %c0_21], %27 {strides = array<i32>} : memref<8x128xf32, #tpu.memory_space<vmem>>, vector<8x128xf32>,
      %cst_22 = arith.constant 2.000000e+01 : f32
      %29 = vector.broadcast %cst_22 : f32 to vector<8x128xf32>
      %30 = arith.cmpf ogt, %20, %29 : vector<8x128xf32>
      %31 = math.log %25 : vector<8x128xf32>
      %32 = arith.select %30, %20, %31 : vector<8x128xi1>, vector<8x128xf32>
      %cst_23 = arith.constant 9.99999974E-5 : f32
      %cst_24 = arith.constant 1.000000e+04 : f32
      %33 = vector.broadcast %cst_23 : f32 to vector<8x128xf32>
      %34 = arith.maximumf %33, %32 : vector<8x128xf32>
      %35 = vector.broadcast %cst_24 : f32 to vector<8x128xf32>
      %36 = arith.minimumf %35, %34 : vector<8x128xf32>
      %c0_25 = arith.constant 0 : index
      %c0_26 = arith.constant 0 : index
      %37 = vector.load %arg8[%c0_25, %c0_26] : memref<8x128xf32, #tpu.memory_space<vmem>>, vector<8x128xf32>
      tpu.vector_store %arg8[%c0_25, %c0_26], %36 {strides = array<i32>} : memref<8x128xf32, #tpu.memory_space<vmem>>, vector<8x128xf32>,
      %cst_27 = arith.constant 9.99999974E-6 : f32
      %cst_28 = arith.constant 1.000000e+06 : f32
      %38 = vector.broadcast %cst_27 : f32 to vector<8x128xf32>
      %39 = arith.maximumf %38, %23 : vector<8x128xf32>
      %40 = vector.broadcast %cst_28 : f32 to vector<8x128xf32>
      %41 = arith.minimumf %40, %39 : vector<8x128xf32>
      %c0_29 = arith.constant 0 : index
      %c0_30 = arith.constant 0 : index
      %42 = vector.load %arg9[%c0_29, %c0_30] : memref<8x128xf32, #tpu.memory_space<vmem>>, vector<8x128xf32>
      tpu.vector_store %arg9[%c0_29, %c0_30], %41 {strides = array<i32>} : memref<8x128xf32, #tpu.memory_space<vmem>>, vector<8x128xf32>,
    } else {
    }
    return
  }
  func.func @transform_0(%arg0: i32, %arg1: i32, %arg2: i32) -> (i32, i32) {
    %c0_i32 = arith.constant 0 : i32
    %c0_i32_0 = arith.constant 0 : i32
    return %arg0, %c0_i32 : i32, i32
  }
  func.func @transform_1(%arg0: i32, %arg1: i32, %arg2: i32) -> (i32, i32) {
    %c0_i32 = arith.constant 0 : i32
    %c0_i32_0 = arith.constant 0 : i32
    return %c0_i32, %arg2 : i32, i32
  }
  func.func @transform_2(%arg0: i32, %arg1: i32, %arg2: i32) -> (i32, i32) {
    %c0_i32 = arith.constant 0 : i32
    %c0_i32_0 = arith.constant 0 : i32
    return %c0_i32, %arg2 : i32, i32
  }
  func.func @transform_3(%arg0: i32, %arg1: i32, %arg2: i32) -> (i32, i32) {
    %c0_i32 = arith.constant 0 : i32
    return %arg2, %arg1 : i32, i32
  }
  func.func @transform_4(%arg0: i32, %arg1: i32, %arg2: i32) -> (i32, i32) {
    %c0_i32 = arith.constant 0 : i32
    return %arg0, %arg1 : i32, i32
  }
  func.func @transform_5(%arg0: i32, %arg1: i32, %arg2: i32) -> (i32, i32) {
    %c0_i32 = arith.constant 0 : i32
    return %arg0, %arg1 : i32, i32
  }
  func.func @transform_6(%arg0: i32, %arg1: i32, %arg2: i32) -> (i32, i32) {
    %c0_i32 = arith.constant 0 : i32
    return %arg0, %arg1 : i32, i32
  }
}

</mosaic_0001>

<bundles_post_ra>
// kernel: tpu_custom_call.1
= control target key start
LH: loop header
LB: loop body
LE: loop exit
PB: predicated region body
PF: predicated region fallthrough
CT: control target
= control target key end

     0   :  { %12 = vsyncpa [#allocation4], 0  ;;  %s580_s0 = inlined_call_operand.hbm [shape: bf16[8,32], index: 0, kind: input, shape index: {}]   ;;  %s581_s1 = inlined_call_operand.hbm [shape: bf16[32,128], index: 1, kind: input, shape index: {}]   ;;  %s582_s2 = inlined_call_operand.vmem [shape: f32[1,128], index: 2, kind: input, shape index: {}]   ;;  %s583_s3 = inlined_call_operand.hbm [shape: bf16[128,128], index: 3, kind: input, shape index: {}]   ;;  %s584_s4 = inlined_call_operand.hbm [shape: f32[8,128], index: 4, kind: output, shape index: {0}]   ;;  %s585_s5 = inlined_call_operand.hbm [shape: f32[8,128], index: 5, kind: output, shape index: {1}]   ;;  %s586_s6 = inlined_call_operand.hbm [shape: f32[8,128], index: 6, kind: output, shape index: {2}]  }
   0x1   :  { %13 = vsyncpa [#allocation7], 0 }
   0x2   :  { %14 = vsyncpa [#allocation5], 0 }
   0x3   :  { %15 = vsyncpa [#allocation11], 0  ;;  %s514_s21 = smov [#allocation6]  }
   0x4   :  { %s31_s22 = sshll.u32 %s514_s21, 4  ;;  %s32_s22 = int_to_ptr.vmem [resolvable:$true] %s31_s22 }
   0x5   :  { %s394_s23 = scalar_lea.vmem %s32_s22, 256  ;;  %p399_p1 = scmp.lt.s32.totalorder %s32_s22, %s32_s22 }
   0x6   :  { %p395_p0 = scmp.ne.s32.totalorder %s32_s22, %s394_s23  ;;  %p400_p2 = scmp.lt.s32.totalorder %s394_s23, %s394_s23 }
   0x8   :  { %p401_p3 = por %p400_p2, %p399_p1 }
   0xa   :  { %p402_p4 = pnand %p401_p3, %p395_p0 }
   0xc   :  { %405 = shalt.err (!%p402_p4)
}
   0xd   :  { %s515_s24 = smov 64   ;;  %s516_s25 = smov 4  }
   0xe   :  { %37 = dma.hbm_to_vmem [thread:$0]  %s581_s1, 256, %s32_s22, [#allocation7], %s515_s24, %s515_s24, %s516_s25  }
   0xf   :  { %s517_s28 = smov [#allocation3]   ;;  %s518_s30 = smov [#allocation8]  }
  0x10   :  { %s22_s29 = sshll.u32 %s517_s28, 4  ;;  %s45_s7 = sshll.u32 %s518_s30, 4  ;;  %s23_s29 = int_to_ptr.vmem [resolvable:$true] %s22_s29  ;;  %s46_s7 = int_to_ptr.vmem [resolvable:$true] %s45_s7 }
  0x11   :  { %s414_s8 = scalar_lea.vmem %s23_s29, 64  ;;  %p419_p6 = scmp.lt.s32.totalorder %s23_s29, %s23_s29 }
  0x12   :  { %p415_p5 = scmp.ne.s32.totalorder %s23_s29, %s414_s8  ;;  %p420_p7 = scmp.lt.s32.totalorder %s414_s8, %s414_s8 }
  0x14   :  { %p421_p8 = por %p420_p7, %p419_p6 }
  0x16   :  { %p422_p9 = pnand %p421_p8, %p415_p5 }
  0x18   :  { %425 = shalt.err (!%p422_p9)
}
  0x19   :  { %25 = dma.hbm_to_vmem [thread:$0]  %s580_s0, 64, %s23_s29, [#allocation4]  }
  0x1a   :  { %s434_s11 = scalar_lea.vmem %s46_s7, 1024  ;;  %p439_p11 = scmp.lt.s32.totalorder %s46_s7, %s46_s7 }
  0x1b   :  { %p435_p10 = scmp.ne.s32.totalorder %s46_s7, %s434_s11  ;;  %p440_p12 = scmp.lt.s32.totalorder %s434_s11, %s434_s11 }
  0x1d   :  { %p441_p13 = por %p440_p12, %p439_p11 }
  0x1f   :  { %p442_p0 = pnand %p441_p13, %p435_p10 }
  0x21   :  { %445 = shalt.err (!%p442_p0)
}
  0x22   :  { %51 = dma.hbm_to_vmem [thread:$0]  %s583_s3, 1024, %s46_s7, [#allocation7], %s515_s24, %s515_s24, %s516_s25  }
  0x23   :  { %506 = dma.done.wait [#allocation4], 64  }
  0x24   :  { %507 = vsyncadd [#allocation4], 4294967232 }
  0x25   :  { %508 = dma.done.wait [#allocation7], 1280  }
  0x26   :  { %509 = vsyncadd [#allocation7], 4294966016  ;;  %v519_v0 = vmov 0.0   ;;  %vm520_vm0 = vmmov 0   ;;  %v370_v1 = vld [vmem:[#allocation6 + $0x8] sm:$0xff]   ;;  %v371_v2 = vld [vmem:[#allocation6] sm:$0xff]  }
  0x27   :  { %332 = vmatprep.subr.bf16.mxu0 %v519_v0  ;;  %336 = vmatprep.mubr.msk.bf16.mxu0 %vm520_vm0, %v519_v0  ;;  %v372_v3 = vld [vmem:[#allocation8 + $0x38] sm:$0xff]   ;;  %vm91_vm1 = vcmask 261120   ;;  %v373_v4 = vld [vmem:[#allocation8 + $0x30] sm:$0xff]   ;;  %v67_v5 = vld [vmem:[#allocation3] sm:$0xf]  ;;  %s522_s14 = smov [#allocation10]  }
  0x28   :  { %340 = vmatprep.subr.bf16.mxu1 %v519_v0  ;;  %356 = vmatprep.mubr.msk.bf16.mxu1 %vm520_vm0, %v519_v0  ;;  %v374_v6 = vld [vmem:[#allocation8 + $0x28] sm:$0xff]   ;;  %v375_v7 = vld [vmem:[#allocation8 + $0x20] sm:$0xff]   ;;  %v376_v8 = vld [vmem:[#allocation8 + $0x18] sm:$0xff]   ;;  %s281_s15 = sshll.u32 %s522_s14, 4  ;;  %s282_s15 = int_to_ptr.vmem [resolvable:$true] %s281_s15 }
  0x29   :  { %333 = vmatpush3.bf16.msra.mxu0 %v370_v1  ;;  %341 = vmatpush3.bf16.msra.mxu1 %v372_v3  ;;  %v377_v9 = vld [vmem:[#allocation8 + $0x10] sm:$0xff]   ;;  %v378_v10 = vld [vmem:[#allocation8 + $0x8] sm:$0xff]   ;;  %v379_v11 = vld [vmem:[#allocation8] sm:$0xff]  }
  0x2a   :  { %334 = vmatprep.subr.bf16.mxu0 %v519_v0  ;;  %342 = vmatprep.subr.bf16.mxu1 %v519_v0  ;;  %v308_v12 = vld [vmem:[%s582_s2] ss:$0 sm:$0xff]  ;;  %s521_s2 = smov [#allocation9]  }
  0x2b   :  { %s271_s13 = sshll.u32 %s521_s2, 4  ;;  %s272_s13 = int_to_ptr.vmem [resolvable:$true] %s271_s13 }
  0x2c   :  { %s446_s16 = scalar_lea.vmem %s272_s13, 128  ;;  %p451_p2 = scmp.lt.s32.totalorder %s272_s13, %s272_s13 }
  0x2d   :  { %335 = vmatpush3.bf16.msra.mxu0 %v371_v2  ;;  %343 = vmatpush3.bf16.msra.mxu1 %v373_v4  ;;  %p447_p1 = scmp.ne.s32.totalorder %s272_s13, %s446_s16  ;;  %p452_p3 = scmp.lt.s32.totalorder %s446_s16, %s446_s16 }
  0x2e   :  { %344 = vmatprep.subr.bf16.mxu1 %v519_v0 }
  0x2f   :  { %p453_p4 = por %p452_p3, %p451_p2 }
  0x30   :  { %337 = vmatmul.mubr.msk.bf16.vlgmr.msra.gmra.mxu0 %vm91_vm1, %v67_v5 }
  0x31   :  { %345 = vmatpush3.bf16.msra.mxu1 %v374_v6  ;;  %p454_p5 = pnand %p453_p4, %p447_p1 }
  0x32   :  { %346 = vmatprep.subr.bf16.mxu1 %v519_v0 }
  0x35   :  { %347 = vmatpush3.bf16.msra.mxu1 %v375_v7 }
  0x36   :  { %348 = vmatprep.subr.bf16.mxu1 %v519_v0 }
  0x39   :  { %349 = vmatpush3.bf16.msra.mxu1 %v376_v8 }
  0x3a   :  { %350 = vmatprep.subr.bf16.mxu1 %v519_v0 }
  0x3d   :  { %351 = vmatpush3.bf16.msra.mxu1 %v377_v9 }
  0x3e   :  { %352 = vmatprep.subr.bf16.mxu1 %v519_v0 }
  0x41   :  { %353 = vmatpush3.bf16.msra.mxu1 %v378_v10 }
  0x42   :  { %354 = vmatprep.subr.bf16.mxu1 %v519_v0 }
  0x45   :  { %355 = vmatpush3.bf16.msra.mxu1 %v379_v11 }
  0xf0   :  { %v129_v13 = vpop.f32.mrf.mxu0 }
  0xf1   :  { %v130_v14 = vadd.f32 %v308_v12, %v129_v13 }
  0xf2   :  { %v338_v15 = vpop.f32.mrf.mxu0 }
  0xf3   :  { %v135_v16 = vmax.f32 %v130_v14, 0.0 }
  0xf4   :  { %v132_v17 = vpop.f32.mrf.mxu0 }
  0xf5   :  { %v136_v18 = vpack.c.bf16 %v135_v16, %v135_v16 }
  0xf6   :  { %v339_v19 = vpop.f32.mrf.mxu0 }
  0xf7   :  { %357 = vmatmul.mubr.bf16.vlgmr.msra.gmra.mxu1 %v136_v18 }
 0x1b7   :  { %v236_v20 = vpop.f32.mrf.mxu1 }
 0x1b8   :  { %v248_v21 = vmin.f32 %v236_v20, 20.0  ;;  %vm255_vm2 = vcmp.gt.f32.partialorder %v236_v20, 20.0 }
 0x1b9   :  { %v358_v22 = vpop.f32.mrf.mxu1 }
 0x1ba   :  { %v249_v23 = vmul.f32 1.442695, %v248_v21 }
 0x1bb   :  { %v239_v24 = vpop.f32.mrf.mxu1 }
 0x1bc   :  { %380 = vpow2.f32 %v249_v23 }
 0x1bd   :  { %v359_v25 = vpop.f32.mrf.mxu1 }
 0x1c9   :  { %v381_v26 = vpop.eup %380 }
 0x1ca   :  { %v251_v27 = vadd.f32 1.0, %v381_v26  ;;  %v262_v28 = vmax.f32 %v381_v26, 1e-05 }
 0x1cc   :  { %382 = vrcp.f32 %v251_v27  ;;  %v263_v29 = vmin.f32 %v262_v28, 1000000.0 }
 0x1cd   :  { %384 = vlog2.f32 %v251_v27 }
 0x1ce   :  { %264 = vst [vmem:[#allocation12] sm:$0xff] %v263_v29 }
 0x1d9   :  { %v383_v30 = vpop.eup %382 }
 0x1da   :  { %v385_v31 = vpop.eup %384  ;;  %v253_v32 = vmul.f32 %v383_v30, %v381_v26 }
 0x1db   :  { %v257_v33 = vmul.f32 0.6931472, %v385_v31 }
 0x1dc   :  { %254 = vst [vmem:[#allocation9] sm:$0xff] %v253_v32 }
 0x1dd   :  { %v258_v34 = vsel %vm255_vm2, %v236_v20, %v257_v33 }
 0x1de   :  { %457 = shalt.err (!%p454_p5)
}
 0x1df   :  { %274 = dma.vmem_to_hbm [thread:$0]  %s272_s13, 128, %s584_s4, [#allocation5]   ;;  %v259_v35 = vmax.f32 %v258_v34, 0.0001 }
 0x1e0   :  { %s523_s19 = smov [#allocation12]   ;;  %s466_s21 = scalar_lea.vmem %s282_s15, 128 }
 0x1e1   :  { %s291_s20 = sshll.u32 %s523_s19, 4  ;;  %v260_v36 = vmin.f32 %v259_v35, 10000.0  ;;  %p467_p6 = scmp.ne.s32.totalorder %s282_s15, %s466_s21  ;;  %s292_s20 = int_to_ptr.vmem [resolvable:$true] %s291_s20 }
 0x1e2   :  { %p471_p7 = scmp.lt.s32.totalorder %s282_s15, %s282_s15  ;;  %p472_p8 = scmp.lt.s32.totalorder %s466_s21, %s466_s21 }
 0x1e3   :  { %261 = vst [vmem:[#allocation10] sm:$0xff] %v260_v36 }
 0x1e4   :  { %p473_p9 = por %p472_p8, %p471_p7 }
 0x1e6   :  { %p474_p10 = pnand %p473_p9, %p467_p6 }
 0x1e8   :  { %477 = shalt.err (!%p474_p10)
}
 0x1e9   :  { %284 = dma.vmem_to_hbm [thread:$0]  %s282_s15, 128, %s585_s5, [#allocation11]  }
 0x1ea   :  { %s486_s24 = scalar_lea.vmem %s292_s20, 128  ;;  %p491_p12 = scmp.lt.s32.totalorder %s292_s20, %s292_s20 }
 0x1eb   :  { %p487_p11 = scmp.ne.s32.totalorder %s292_s20, %s486_s24  ;;  %p492_p13 = scmp.lt.s32.totalorder %s486_s24, %s486_s24 }
 0x1ed   :  { %p493_p0 = por %p492_p13, %p491_p12 }
 0x1ef   :  { %p494_p1 = pnand %p493_p0, %p487_p11 }
 0x1f1   :  { %497 = shalt.err (!%p494_p1)
}
 0x1f2   :  { %294 = dma.vmem_to_hbm [thread:$0]  %s292_s20, 128, %s586_s6, [#allocation11]  }
 0x1f3   :  { %510 = dma.done.wait [#allocation5], 128  }
 0x1f4   :  { %511 = vsyncadd [#allocation5], 4294967168 }
 0x1f5   :  { %512 = dma.done.wait [#allocation11], 256  }
 0x1f6   :  { %513 = vsyncadd [#allocation11], 4294967040 }
 0x1f7   :  { %304 = vsyncpa [#allocation4], 1 }
 0x1f8   :  { %305 = vsyncpa [#allocation7], 1 }
 0x1f9   :  { %306 = vsyncpa [#allocation5], 1 }
 0x1fa   :  { %307 = vsyncpa [#allocation11], 1 }

</bundles_post_ra>
